<compile_context>
chip_gen: v6e
topology: v6e:2x2x1
jax: 0.10.0
libtpu: 0.0.40
codegen_flags: <defaults>
</compile_context>

<pallas_src>
import functools

import jax
import jax.numpy as jnp
from jax import lax
from jax.experimental import pallas as pl
from jax.experimental.pallas import tpu as pltpu

CHN_MID = 32
EPS = 0.1
LEAKY_SLOPE = 0.2


def _round_up(x, m):
    return ((x + m - 1) // m) * m


def _elementwise_bf16_ok():
    """bf16 VALU exists on v6e/v7x; v5e and older have no bf16 VPU datapath."""
    try:
        kind = jax.devices()[0].device_kind.lower()
    except Exception:
        return False
    return ("v6" in kind) or ("v7" in kind)


def _dist2logit_kernel(d0_ref, d1_ref, w1_ref, b1_ref, w2_ref, b2_ref,
                       w3_ref, b3_ref, o_ref, *, chunk, ew_dtype):
    """One pixel tile, processed in vreg-resident lane chunks.

    d0_ref/d1_ref: (1, TP) f32   pixels on lanes
    w1_ref: (32, 4)  ew_dtype    folded layer-1 weights [d0, d1, d0/(d1+eps), d1/(d0+eps)]
    b1_ref: (32, 1)  ew_dtype
    w2_ref: (32, 32) bf16
    b2_ref: (32, 1)  f32
    w3_ref: (32, 1)  f32         layer-3 weights as a column
    b3_ref: (1, 1)   f32
    o_ref : (1, TP)  f32
    """
    tp = d0_ref.shape[1]
    nchunks = tp // chunk

    # Weights are tiny; load once, live in vregs across the chunk loop.
    w1 = w1_ref[...]
    b1 = b1_ref[...]
    w2 = w2_ref[...]
    b2 = b2_ref[...]
    w3 = w3_ref[...]
    b3 = b3_ref[...]
    slope1 = jnp.asarray(LEAKY_SLOPE, ew_dtype)
    slope2 = jnp.float32(LEAKY_SLOPE)

    def body(c, carry):
        lo = pl.multiple_of(c * chunk, chunk)
        d0 = d0_ref[:, pl.ds(lo, chunk)]          # (1, chunk) f32
        d1 = d1_ref[:, pl.ds(lo, chunk)]

        # Ratio features: approx reciprocal rides the (otherwise idle) EUP slot.
        r0 = d0 * pl.reciprocal(d1 + EPS, approx=True)
        r1 = d1 * pl.reciprocal(d0 + EPS, approx=True)

        d0c = d0.astype(ew_dtype)
        d1c = d1.astype(ew_dtype)
        r0c = r0.astype(ew_dtype)
        r1c = r1.astype(ew_dtype)

        # ----- Layer 1: Conv2d(5, 32, 1) as broadcast mul-adds on the VPU.
        # (d0 - d1) was folded into the d0 / d1 weight columns in the wrapper.
        h = (w1[:, 0:1] * d0c + w1[:, 1:2] * d1c +
             w1[:, 2:3] * r0c + w1[:, 3:4] * r1c + b1)
        h = jnp.maximum(h, slope1 * h)            # LeakyReLU(0.2)

        # ----- Layer 2: Conv2d(32, 32, 1) on the MXU; bf16 in, f32 accumulate.
        # (When ew_dtype is bf16, h is already bf16 and the astype is a no-op.)
        h2 = jnp.dot(w2, h.astype(jnp.bfloat16),
                     preferred_element_type=jnp.float32) + b2
        h2 = jnp.maximum(h2, slope2 * h2)         # LeakyReLU(0.2)

        # ----- Layer 3: Conv2d(32, 1, 1) as VPU multiply + sublane (XLU) reduce.
        logit = jnp.sum(h2 * w3, axis=0, keepdims=True) + b3

        o_ref[:, pl.ds(lo, chunk)] = jax.nn.sigmoid(logit).astype(o_ref.dtype)
        return carry

    lax.fori_loop(0, nchunks, body, 0, unroll=min(2, nchunks))


@functools.partial(
    jax.jit,
    static_argnames=("tile_p", "chunk_p", "use_bf16_ew", "vmem_limit_mb"))
def _dist2logit_forward_impl(d0, d1, params, tile_p, chunk_p, use_bf16_ew,
                             vmem_limit_mb):
    w1, b1, w2, b2, w3, b3 = params
    N, C, H, W = d0.shape
    assert C == 1 and d1.shape == d0.shape
    P = N * H * W

    ew_dtype = jnp.bfloat16 if use_bf16_ew else jnp.float32

    # Flatten pixels onto the lane axis. No concatenation: two cheap reshapes,
    # two DMA streams into the kernel.
    d0f = d0.reshape(1, P).astype(jnp.float32)
    d1f = d1.reshape(1, P).astype(jnp.float32)

    # Pixel tile: as large as requested but no larger than the problem; for
    # >=64K-pixel inputs cap at ~P/2 so the ("parallel",) grid has at least two
    # steps (feeds both v7x TensorCores).
    tp = min(_round_up(tile_p, 128), _round_up(P, 128))
    if P >= (1 << 16):
        tp = min(tp, _round_up((P + 1) // 2, 128))
    chunk = min(_round_up(chunk_p, 128), tp)
    tp = _round_up(tp, chunk)                     # chunk evenly divides the tile

    P_pad = _round_up(P, tp)
    if P_pad != P:                                # pad only when actually needed
        pad = ((0, 0), (0, P_pad - P))
        d0f = jnp.pad(d0f, pad, constant_values=1.0)   # keeps the divides finite
        d1f = jnp.pad(d1f, pad, constant_values=1.0)

    # Fold the (d0 - d1) column of w1 into the d0 / d1 columns:
    #   w0*d0 + w1*d1 + w2*(d0-d1) == (w0+w2)*d0 + (w1-w2)*d1
    w1f = jnp.stack(
        [w1[:, 0] + w1[:, 2], w1[:, 1] - w1[:, 2], w1[:, 3], w1[:, 4]],
        axis=1).astype(ew_dtype)                  # (32, 4)
    b1c = b1.astype(ew_dtype)                     # (32, 1)
    w2b = w2.astype(jnp.bfloat16)                 # (32, 32) bf16 MXU operand
    b2c = b2.astype(jnp.float32)                  # (32, 1)
    w3c = w3.T.astype(jnp.float32)                # (32, 1) column for layer 3
    b3c = b3.astype(jnp.float32)                  # (1, 1)

    grid = (P_pad // tp,)
    pix_spec = pl.BlockSpec((1, tp), lambda i: (0, i))

    def resident(shape):                          # weights stay in VMEM
        return pl.BlockSpec(shape, lambda i: (0, 0))

    kernel = functools.partial(_dist2logit_kernel, chunk=chunk,
                               ew_dtype=ew_dtype)

    out = pl.pallas_call(
        kernel,
        out_shape=jax.ShapeDtypeStruct((1, P_pad), jnp.float32),
        grid=grid,
        in_specs=[
            pix_spec,                 # d0
            pix_spec,                 # d1
            resident(w1f.shape),      # (32, 4)
            resident(b1c.shape),      # (32, 1)
            resident(w2b.shape),      # (32, 32)
            resident(b2c.shape),      # (32, 1)
            resident(w3c.shape),      # (32, 1)
            resident(b3c.shape),      # (1, 1)
        ],
        out_specs=pix_spec,
        compiler_params=pltpu.CompilerParams(
            dimension_semantics=("parallel",),
            vmem_limit_bytes=vmem_limit_mb << 20),
    )(d0f, d1f, w1f, b1c, w2b, b2c, w3c, b3c)

    return out[:, :P].reshape(N, 1, H, W)


def dist2logit_forward(d0, d1, params, tile_p=32768, chunk_p=512,
                       vmem_limit_mb=32, use_bf16_elementwise=None):
    """d0, d1: (N, 1, H, W) float32  ->  (N, 1, H, W) float32."""
    if use_bf16_elementwise is None:
        use_bf16_elementwise = _elementwise_bf16_ok()
    return _dist2logit_forward_impl(d0, d1, params, tile_p, chunk_p,
                                    bool(use_bf16_elementwise), vmem_limit_mb)


def init_params(key, chn_mid=CHN_MID):
    """Deterministic synthetic weights matching the PyTorch layer shapes.

    Conv2d(5, 32, 1)  -> w1: (32, 5),  b1: (32, 1)
    Conv2d(32, 32, 1) -> w2: (32, 32), b2: (32, 1)
    Conv2d(32, 1, 1)  -> w3: (1, 32),  b3: (1, 1)
    (1x1 conv kernels (C_out, C_in, 1, 1) squeezed to (C_out, C_in).)
    """
    k1, k2, k3, k4, k5, k6 = jax.random.split(key, 6)
    w1 = jax.random.normal(k1, (chn_mid, 5), jnp.float32) * (1.0 / jnp.sqrt(5.0))
    b1 = jax.random.normal(k2, (chn_mid, 1), jnp.float32) * 0.1
    w2 = jax.random.normal(k3, (chn_mid, chn_mid), jnp.float32) * (1.0 / jnp.sqrt(chn_mid))
    b2 = jax.random.normal(k4, (chn_mid, 1), jnp.float32) * 0.1
    w3 = jax.random.normal(k5, (1, chn_mid), jnp.float32) * (1.0 / jnp.sqrt(chn_mid))
    b3 = jax.random.normal(k6, (1, 1), jnp.float32) * 0.1
    return (w1, b1, w2, b2, w3, b3)


def reference_forward(d0, d1, params, eps=EPS):
    """Pure-JAX f32 reference (NCHW, 1x1 convs as einsums) for validation."""
    w1, b1, w2, b2, w3, b3 = params
    x = jnp.concatenate(
        [d0, d1, d0 - d1, d0 / (d1 + eps), d1 / (d0 + eps)], axis=1)  # (N,5,H,W)

    def conv1x1(x, w, b):  # w: (Cout, Cin), b: (Cout, 1)
        y = jnp.einsum("oc,nchw->nohw", w, x)
        return y + b[None, :, :, None]  # b broadcasts over N, H, W

    h = conv1x1(x, w1, b1)
    h = jnp.where(h > 0, h, LEAKY_SLOPE * h)
    h = conv1x1(h, w2, b2)
    h = jnp.where(h > 0, h, LEAKY_SLOPE * h)
    h = conv1x1(h, w3, b3)
    return jax.nn.sigmoid(h)


if __name__ == "__main__":
    key = jax.random.PRNGKey(0)
    kp, k0, k1, k2, k3 = jax.random.split(key, 5)

    params = init_params(kp)

    # Tolerance: bf16 layer-1/layer-2 operands + approx reciprocals vs. an f32
    # reference; accumulated error on the sigmoid output is ~1e-2 worst case.
    ATOL = 3e-2

    # Primary test: N=2, 16x16 images, default (large, clamped) tile,
    # device-appropriate elementwise dtype (bf16 on v6e/v7x, f32 on v5e).
    N, H, W = 2, 16, 16
    d0 = jnp.abs(jax.random.normal(k0, (N, 1, H, W), jnp.float32))
    d1 = jnp.abs(jax.random.normal(k1, (N, 1, H, W), jnp.float32))

    out = jax.block_until_ready(dist2logit_forward(d0, d1, params))
    ref = reference_forward(d0, d1, params)
    assert out.shape == (N, 1, H, W)
    assert jnp.allclose(out, ref, atol=ATOL), (
        f"max err {jnp.max(jnp.abs(out - ref))}")

    # Secondary test: non-128-multiple pixel count + small tile -> multi-step
    # grid with lane padding and chunk==tile clamping exercised.
    N2, H2, W2 = 1, 16, 15
    e0 = jnp.abs(jax.random.normal(k2, (N2, 1, H2, W2), jnp.float32))
    e1 = jnp.abs(jax.random.normal(k3, (N2, 1, H2, W2), jnp.float32))
    out2 = jax.block_until_ready(
        dist2logit_forward(e0, e1, params, tile_p=128, chunk_p=128))
    ref2 = reference_forward(e0, e1, params)
    assert out2.shape == (N2, 1, H2, W2)
    assert jnp.allclose(out2, ref2, atol=ATOL), (
        f"max err {jnp.max(jnp.abs(out2 - ref2))}")

    # Coverage test: force the f32-elementwise (v5e-style) path regardless of
    # the chip so both compute-dtype variants are compiled and checked.
    out3 = jax.block_until_ready(
        dist2logit_forward(d0, d1, params, use_bf16_elementwise=False))
    assert jnp.allclose(out3, ref, atol=2e-2), (
        f"max err {jnp.max(jnp.abs(out3 - ref))}")

    print("KERNEL_OK")
</pallas_src>

<mosaic_0001>
module attributes {stable_mosaic.version = 11 : i64} {
  func.func @_dist2logit_kernel(%arg0: i32, %arg1: memref<1x512xf32, #tpu.memory_space<vmem>>, %arg2: memref<1x512xf32, #tpu.memory_space<vmem>>, %arg3: memref<32x4xf32, #tpu.memory_space<vmem>>, %arg4: memref<32x1xf32, #tpu.memory_space<vmem>>, %arg5: memref<32x32xbf16, #tpu.memory_space<vmem>>, %arg6: memref<32x1xf32, #tpu.memory_space<vmem>>, %arg7: memref<32x1xf32, #tpu.memory_space<vmem>>, %arg8: memref<1x1xf32, #tpu.memory_space<vmem>>, %arg9: memref<1x512xf32, #tpu.memory_space<vmem>>) attributes {dimension_semantics = [#tpu.dimension_semantics<parallel>], iteration_bounds = array<i64: 1>, scalar_prefetch = 0 : i64, scratch_operands = 0 : i64, tpu.core_type = #tpu.core_type<tc>, window_params = [{transform_indices = @transform_0, window_bounds = array<i64: 1, 512>}, {transform_indices = @transform_1, window_bounds = array<i64: 1, 512>}, {pipeline_mode = #tpu.pipeline_mode<synchronous>, transform_indices = @transform_2, window_bounds = array<i64: 32, 4>}, {pipeline_mode = #tpu.pipeline_mode<synchronous>, transform_indices = @transform_3, window_bounds = array<i64: 32, 1>}, {pipeline_mode = #tpu.pipeline_mode<synchronous>, transform_indices = @transform_4, window_bounds = array<i64: 32, 32>}, {pipeline_mode = #tpu.pipeline_mode<synchronous>, transform_indices = @transform_5, window_bounds = array<i64: 32, 1>}, {pipeline_mode = #tpu.pipeline_mode<synchronous>, transform_indices = @transform_6, window_bounds = array<i64: 32, 1>}, {pipeline_mode = #tpu.pipeline_mode<synchronous>, transform_indices = @transform_7, window_bounds = array<i64: 1, 1>}, {transform_indices = @transform_8, window_bounds = array<i64: 1, 512>}]} {
    %c0 = arith.constant 0 : index
    %c0_0 = arith.constant 0 : index
    %0 = vector.load %arg3[%c0, %c0_0] : memref<32x4xf32, #tpu.memory_space<vmem>>, vector<32x4xf32>
    %c0_1 = arith.constant 0 : index
    %c0_2 = arith.constant 0 : index
    %1 = vector.load %arg4[%c0_1, %c0_2] : memref<32x1xf32, #tpu.memory_space<vmem>>, vector<32x1xf32>
    %c0_3 = arith.constant 0 : index
    %c0_4 = arith.constant 0 : index
    %2 = vector.load %arg5[%c0_3, %c0_4] : memref<32x32xbf16, #tpu.memory_space<vmem>>, vector<32x32xbf16>
    %c0_5 = arith.constant 0 : index
    %c0_6 = arith.constant 0 : index
    %3 = vector.load %arg6[%c0_5, %c0_6] : memref<32x1xf32, #tpu.memory_space<vmem>>, vector<32x1xf32>
    %c0_7 = arith.constant 0 : index
    %c0_8 = arith.constant 0 : index
    %4 = vector.load %arg7[%c0_7, %c0_8] : memref<32x1xf32, #tpu.memory_space<vmem>>, vector<32x1xf32>
    %c0_9 = arith.constant 0 : index
    %c0_10 = arith.constant 0 : index
    %5 = vector.load %arg8[%c0_9, %c0_10] : memref<1x1xf32, #tpu.memory_space<vmem>>, vector<1x1xf32>
    %cst = arith.constant 2.000000e-01 : f32
    %cst_11 = arith.constant 2.000000e-01 : f32
    %c0_i32 = arith.constant 0 : i32
    %c512_i32 = arith.constant 512 : i32
    %6 = arith.muli %c0_i32, %c512_i32 : i32
    %7 = tpu.assume_multiple %6, 512 : i32
    %c0_12 = arith.constant 0 : index
    %8 = arith.index_cast %7 : i32 to index
    %9 = vector.load %arg1[%c0_12, %8] : memref<1x512xf32, #tpu.memory_space<vmem>>, vector<1x512xf32>
    %c0_13 = arith.constant 0 : index
    %10 = arith.index_cast %7 : i32 to index
    %11 = vector.load %arg2[%c0_13, %10] : memref<1x512xf32, #tpu.memory_space<vmem>>, vector<1x512xf32>
    %cst_14 = arith.constant 1.000000e-01 : f32
    %12 = vector.broadcast %cst_14 : f32 to vector<1x512xf32>
    %13 = arith.addf %11, %12 : vector<1x512xf32>
    %14 = tpu.reciprocal %13 {approx = true} : vector<1x512xf32> -> vector<1x512xf32>
    %15 = arith.mulf %9, %14 : vector<1x512xf32>
    %cst_15 = arith.constant 1.000000e-01 : f32
    %16 = vector.broadcast %cst_15 : f32 to vector<1x512xf32>
    %17 = arith.addf %9, %16 : vector<1x512xf32>
    %18 = tpu.reciprocal %17 {approx = true} : vector<1x512xf32> -> vector<1x512xf32>
    %19 = arith.mulf %11, %18 : vector<1x512xf32>
    %20 = vector.extract_strided_slice %0 {offsets = [0, 0], sizes = [32, 1], strides = [1, 1]} : vector<32x4xf32> to vector<32x1xf32>
    %21 = vector.broadcast %20 : vector<32x1xf32> to vector<32x512xf32>
    %22 = vector.broadcast %9 : vector<1x512xf32> to vector<32x512xf32>
    %23 = arith.mulf %21, %22 : vector<32x512xf32>
    %24 = vector.extract_strided_slice %0 {offsets = [0, 1], sizes = [32, 1], strides = [1, 1]} : vector<32x4xf32> to vector<32x1xf32>
    %25 = vector.broadcast %24 : vector<32x1xf32> to vector<32x512xf32>
    %26 = vector.broadcast %11 : vector<1x512xf32> to vector<32x512xf32>
    %27 = arith.mulf %25, %26 : vector<32x512xf32>
    %28 = arith.addf %23, %27 : vector<32x512xf32>
    %29 = vector.extract_strided_slice %0 {offsets = [0, 2], sizes = [32, 1], strides = [1, 1]} : vector<32x4xf32> to vector<32x1xf32>
    %30 = vector.broadcast %29 : vector<32x1xf32> to vector<32x512xf32>
    %31 = vector.broadcast %15 : vector<1x512xf32> to vector<32x512xf32>
    %32 = arith.mulf %30, %31 : vector<32x512xf32>
    %33 = arith.addf %28, %32 : vector<32x512xf32>
    %34 = vector.extract_strided_slice %0 {offsets = [0, 3], sizes = [32, 1], strides = [1, 1]} : vector<32x4xf32> to vector<32x1xf32>
    %35 = vector.broadcast %34 : vector<32x1xf32> to vector<32x512xf32>
    %36 = vector.broadcast %19 : vector<1x512xf32> to vector<32x512xf32>
    %37 = arith.mulf %35, %36 : vector<32x512xf32>
    %38 = arith.addf %33, %37 : vector<32x512xf32>
    %39 = vector.broadcast %1 : vector<32x1xf32> to vector<32x512xf32>
    %40 = arith.addf %38, %39 : vector<32x512xf32>
    %41 = vector.broadcast %cst : f32 to vector<32x512xf32>
    %42 = arith.mulf %41, %40 : vector<32x512xf32>
    %43 = arith.maximumf %40, %42 : vector<32x512xf32>
    %44 = arith.truncf %43 : vector<32x512xf32> to vector<32x512xbf16>
    %cst_16 = arith.constant dense<0.000000e+00> : vector<32x512xf32>
    %45 = tpu.matmul %2, %44, %cst_16 {dimension_numbers = #tpu.dot_dimension_numbers<[1], [0], [0], [1], [0, 0, 1, 1], [], []>} : vector<32x32xbf16>, vector<32x512xbf16>, vector<32x512xf32> -> vector<32x512xf32>
    %46 = vector.broadcast %3 : vector<32x1xf32> to vector<32x512xf32>
    %47 = arith.addf %45, %46 : vector<32x512xf32>
    %48 = vector.broadcast %cst_11 : f32 to vector<32x512xf32>
    %49 = arith.mulf %48, %47 : vector<32x512xf32>
    %50 = arith.maximumf %47, %49 : vector<32x512xf32>
    %51 = vector.broadcast %4 : vector<32x1xf32> to vector<32x512xf32>
    %52 = arith.mulf %50, %51 : vector<32x512xf32>
    %cst_17 = arith.constant dense<0.000000e+00> : vector<512xf32>
    %53 = vector.multi_reduction <add>, %52, %cst_17 [0] : vector<32x512xf32> to vector<512xf32>
    %54 = vector.shape_cast %53 : vector<512xf32> to vector<1x512xf32>
    %55 = vector.broadcast %5 : vector<1x1xf32> to vector<1x512xf32>
    %56 = arith.addf %54, %55 : vector<1x512xf32>
    %57 = arith.negf %56 : vector<1x512xf32>
    %58 = math.exp %57 : vector<1x512xf32>
    %cst_18 = arith.constant 1.000000e+00 : f32
    %59 = vector.broadcast %cst_18 : f32 to vector<1x512xf32>
    %60 = arith.addf %59, %58 : vector<1x512xf32>
    %61 = arith.divf %59, %60 : vector<1x512xf32>
    %c0_19 = arith.constant 0 : index
    %62 = arith.index_cast %7 : i32 to index
    %63 = vector.load %arg9[%c0_19, %62] : memref<1x512xf32, #tpu.memory_space<vmem>>, vector<1x512xf32>
    tpu.vector_store %arg9[%c0_19, %62], %61 {strides = array<i32>} : memref<1x512xf32, #tpu.memory_space<vmem>>, vector<1x512xf32>,
    %c1_i32 = arith.constant 1 : i32
    return
  }
  func.func @transform_0(%arg0: i32) -> (i32, i32) {
    %c0_i32 = arith.constant 0 : i32
    %c0_i32_0 = arith.constant 0 : i32
    return %c0_i32, %arg0 : i32, i32
  }
  func.func @transform_1(%arg0: i32) -> (i32, i32) {
    %c0_i32 = arith.constant 0 : i32
    %c0_i32_0 = arith.constant 0 : i32
    return %c0_i32, %arg0 : i32, i32
  }
  func.func @transform_2(%arg0: i32) -> (i32, i32) {
    %c0_i32 = arith.constant 0 : i32
    %c0_i32_0 = arith.constant 0 : i32
    %c0_i32_1 = arith.constant 0 : i32
    return %c0_i32, %c0_i32_0 : i32, i32
  }
  func.func @transform_3(%arg0: i32) -> (i32, i32) {
    %c0_i32 = arith.constant 0 : i32
    %c0_i32_0 = arith.constant 0 : i32
    %c0_i32_1 = arith.constant 0 : i32
    return %c0_i32, %c0_i32_0 : i32, i32
  }
  func.func @transform_4(%arg0: i32) -> (i32, i32) {
    %c0_i32 = arith.constant 0 : i32
    %c0_i32_0 = arith.constant 0 : i32
    %c0_i32_1 = arith.constant 0 : i32
    return %c0_i32, %c0_i32_0 : i32, i32
  }
  func.func @transform_5(%arg0: i32) -> (i32, i32) {
    %c0_i32 = arith.constant 0 : i32
    %c0_i32_0 = arith.constant 0 : i32
    %c0_i32_1 = arith.constant 0 : i32
    return %c0_i32, %c0_i32_0 : i32, i32
  }
  func.func @transform_6(%arg0: i32) -> (i32, i32) {
    %c0_i32 = arith.constant 0 : i32
    %c0_i32_0 = arith.constant 0 : i32
    %c0_i32_1 = arith.constant 0 : i32
    return %c0_i32, %c0_i32_0 : i32, i32
  }
  func.func @transform_7(%arg0: i32) -> (i32, i32) {
    %c0_i32 = arith.constant 0 : i32
    %c0_i32_0 = arith.constant 0 : i32
    %c0_i32_1 = arith.constant 0 : i32
    return %c0_i32, %c0_i32_0 : i32, i32
  }
  func.func @transform_8(%arg0: i32) -> (i32, i32) {
    %c0_i32 = arith.constant 0 : i32
    %c0_i32_0 = arith.constant 0 : i32
    return %c0_i32, %arg0 : i32, i32
  }
}

</mosaic_0001>

<bundles_post_ra>
// kernel: _dist2logit_forward_impl.1
= control target key start
LH: loop header
LB: loop body
LE: loop exit
PB: predicated region body
PF: predicated region fallthrough
CT: control target
= control target key end

     0   :  { %v771_v0 = vmov 3   ;;  %v772_v1 = vmov 1   ;;  %v1050_v5 = vmov 0   ;;  %v774_v6 = vmov 2   ;;  %s1040_s2 = inlined_call_operand.vmem [shape: f32[32,4], index: 2, kind: input, shape index: {}]   ;;  %s1041_s7 = inlined_call_operand.<no memory space> [shape: f32[1,1], index: 7, kind: input, shape index: {}]   ;;  %s1042_s3 = inlined_call_operand.vmem [shape: f32[32,1], index: 3, kind: input, shape index: {}]   ;;  %s1043_s5 = inlined_call_operand.vmem [shape: f32[32,1], index: 5, kind: input, shape index: {}]   ;;  %s1044_s6 = inlined_call_operand.vmem [shape: f32[32,1], index: 6, kind: input, shape index: {}]   ;;  %s1045_s4 = inlined_call_operand.vmem [shape: bf16[32,32], index: 4, kind: input, shape index: {}]   ;;  %s1046_s0 = inlined_call_operand.vmem [shape: f32[1,512], index: 0, kind: input, shape index: {}]   ;;  %s1047_s1 = inlined_call_operand.vmem [shape: f32[1,512], index: 1, kind: input, shape index: {}]   ;;  %s1048_s8 = inlined_call_operand.vmem [shape: f32[1,512], index: 8, kind: output, shape index: {}]  }
   0x1   :  { %742 = vset.pattern.permute.xlu0 %v771_v0  ;;  %738 = vset.pattern.permute.xlu1 %v772_v1  ;;  %v34_v2 = vld [vmem:[%s1040_s2 + $0x10] sm:$0xff]  ;;  %v13_v3 = vstv %s1041_s7  ;;  %v35_v4 = vld [vmem:[%s1040_s2 + $0x18] sm:$0xff]  ;;  %v33_v7 = vld [vmem:[%s1040_s2 + $0x8] sm:$0xff]  ;;  %v1049_v28 = vlaneseq  ;;  %vm431_vm0 = vcmask 261120  }
   0x2   :  { %265 = vperm.xlu0 %742, %v34_v2   ;;  %127 = vperm.xlu1 %738, %v34_v2   ;;  %14 = vst [vmem:[#allocation2] sm:$0x1] %v13_v3  ;;  %v32_v8 = vld [vmem:[%s1040_s2] sm:$0xff]  ;;  %v38_v9 = vld [vmem:[%s1042_s3 + $0x10] sm:$0xff]  ;;  %v37_v10 = vld [vmem:[%s1042_s3 + $0x8] sm:$0xff] }
   0x3   :  { %470 = vmatprep.mubr.bf16.mxu0 %v1050_v5  ;;  %523 = vmatprep.mubr.bf16.mxu1 %v1050_v5  ;;  %v45_v11 = vld [vmem:[%s1043_s5 + $0x8] sm:$0xff]  ;;  %v47_v12 = vld [vmem:[%s1043_s5 + $0x18] sm:$0xff]  ;;  %v36_v16 = vld [vmem:[%s1042_s3] sm:$0xff]  ;;  %v884_v30 = vshrl.u32 %v1049_v28, 7 }
   0x4   :  { %v49_v13 = vld [vmem:[%s1044_s6 + $0x8] sm:$0xff]  ;;  %v51_v14 = vld [vmem:[%s1044_s6 + $0x18] sm:$0xff]  ;;  %v44_v17 = vld [vmem:[%s1043_s5] sm:$0xff] }
   0x5   :  { %v39_v15 = vld [vmem:[%s1042_s3 + $0x18] sm:$0xff]  ;;  %v46_v18 = vld [vmem:[%s1043_s5 + $0x10] sm:$0xff]  ;;  %v48_v19 = vld [vmem:[%s1044_s6] sm:$0xff]  ;;  %1057 = vst [vmem:[#allocation3_spill] sm:$0xff] %v884_v30  ;;  %v887_v34 = vsub.s32 0, %v884_v30  ;;  %v88_v35 = vsub.s32 1, %v884_v30 }
   0x6   :  { %743 = vset.pattern.permute.xlu0 %v774_v6  ;;  %131 = vperm.xlu1 %738, %v35_v4   ;;  %v50_v20 = vld [vmem:[%s1044_s6 + $0x10] sm:$0xff]  ;;  %v53_v22 = vld [vmem:[%s1046_s0] sm:$0xf]  ;;  %v92_v36 = vsub.s32 2, %v884_v30  ;;  %v96_v37 = vsub.s32 3, %v884_v30 }
   0x7   :  { %196 = vperm.xlu0 %743, %v34_v2   ;;  %v54_v23 = vld [vmem:[%s1047_s1] sm:$0xf]  ;;  %v58_v24 = vadd.f32 0.1, %v53_v22  ;;  %1058 = vst [vmem:[#allocation4_spill] sm:$0xff] %v887_v34  ;;  %v85_v52 = vrot.slane %v53_v22, %v887_v34  ;;  %v911_v53 = vrot.slane %v53_v22, %v88_v35 }
   0x8   :  { %v55_v25 = vadd.f32 0.1, %v54_v23  ;;  %v893_v42 = vrot.slane %v54_v23, %v887_v34  ;;  %v895_v43 = vrot.slane %v54_v23, %v88_v35  ;;  %v897_v44 = vrot.slane %v54_v23, %v92_v36 }
   0x9   :  { %v52_v21 = vld [vmem:[#allocation2] sm:$0x1]  ;;  %751 = vrcp.f32 %v58_v24  ;;  %v899_v45 = vrot.slane %v54_v23, %v96_v37  ;;  %v913_v54 = vrot.slane %v53_v22, %v92_v36  ;;  %v915_v55 = vrot.slane %v53_v22, %v96_v37 }
   0xa   :  { %739 = vset.pattern.permute.xlu1 %v774_v6  ;;  %753 = vrcp.f32 %v55_v25 }
   0xb   :  { %200 = vperm.xlu1 %739, %v35_v4   ;;  %192 = vperm.xlu0 %743, %v33_v7  }
   0xf   :  { %740 = vset.pattern.permute.xlu1 %v1050_v5  ;;  %746 = vset.pattern.permute.xlu0 %v1050_v5 }
  0x10   :  { %73 = vperm.xlu0 %746, %v34_v2   ;;  %63 = vperm.xlu1 %740, %v32_v8  }
  0x14   :  { %78 = vperm.xlu0 %746, %v35_v4   ;;  %741 = vset.pattern.permute.xlu1 %v772_v1 }
  0x15   :  { %119 = vperm.xlu1 %741, %v32_v8  }
  0x16   :  { %v752_v32 = vpop.eup %751 }
  0x17   :  { %v754_v33 = vpop.eup %753  ;;  %v60_v40 = vmul.f32 %v752_v32, %v54_v23 }
  0x18   :  { %68 = vperm.xlu0 %746, %v33_v7   ;;  %v57_v41 = vmul.f32 %v754_v33, %v53_v22 }
  0x19   :  { %123 = vperm.xlu1 %741, %v33_v7   ;;  %v902_v46 = vrot.slane %v60_v40, %v887_v34  ;;  %v904_v47 = vrot.slane %v60_v40, %v88_v35  ;;  %v906_v48 = vrot.slane %v60_v40, %v92_v36  ;;  %v908_v49 = vrot.slane %v60_v40, %v96_v37 }
  0x1a   :  { %v918_v56 = vrot.slane %v57_v41, %v887_v34  ;;  %v920_v57 = vrot.slane %v57_v41, %v88_v35  ;;  %v922_v58 = vrot.slane %v57_v41, %v92_v36  ;;  %v924_v59 = vrot.slane %v57_v41, %v96_v37 }
  0x1c   :  { %337 = vperm.xlu0 %746, %v38_v9   ;;  %1059 = vst [vmem:[#allocation5_spill] sm:$0xff] %v920_v57  ;;  %1060 = vst [vmem:[#allocation6_spill] sm:$0xff] %v922_v58 }
  0x1d   :  { %744 = vset.pattern.permute.xlu1 %v771_v0  ;;  %1061 = vst [vmem:[#allocation7_spill] sm:$0xff] %v924_v59 }
  0x1e   :  { %269 = vperm.xlu1 %744, %v35_v4  }
  0x20   :  { %332 = vperm.xlu0 %746, %v37_v10  }
  0x22   :  { %745 = vset.pattern.permute.xlu1 %v774_v6 }
  0x23   :  { %188 = vperm.xlu1 %745, %v32_v8  }
  0x24   :  { %408 = vperm.xlu0 %746, %v45_v11  }
  0x27   :  { %747 = vset.pattern.permute.xlu1 %v771_v0 }
  0x28   :  { %418 = vperm.xlu0 %746, %v47_v12   ;;  %257 = vperm.xlu1 %747, %v32_v8  }
  0x2c   :  { %583 = vperm.xlu0 %746, %v49_v13   ;;  %261 = vperm.xlu1 %747, %v33_v7  }
  0x30   :  { %593 = vperm.xlu0 %746, %v51_v14   ;;  %748 = vset.pattern.permute.xlu1 %v1050_v5 }
  0x31   :  { %342 = vperm.xlu1 %748, %v39_v15  }
  0x35   :  { %327 = vperm.xlu1 %748, %v36_v16  }
  0x39   :  { %403 = vperm.xlu1 %748, %v44_v17  }
  0x3d   :  { %413 = vperm.xlu1 %748, %v46_v18  }
  0x41   :  { %578 = vperm.xlu1 %748, %v48_v19  }
  0x45   :  { %588 = vperm.xlu1 %748, %v50_v20  }
  0x49   :  { %650 = vperm.xlu1 %748, %v52_v21  }
  0x7d   :  { %v128_v26 = vpop.permute.xlu1 %127  ;;  %v266_v27 = vpop.permute.xlu0 %265 }
  0x7e   :  { %v163_v60 = vmul.f32 %v893_v42, %v128_v26  ;;  %v164_v61 = vmul.f32 %v895_v43, %v128_v26  ;;  %v165_v62 = vmul.f32 %v897_v44, %v128_v26  ;;  %v166_v63 = vmul.f32 %v899_v45, %v128_v26 }
  0x7f   :  { %v931_v0 = vmul.f32 %v902_v46, %v266_v27  ;;  %v302_v1 = vmul.f32 %v904_v47, %v266_v27  ;;  %v935_v2 = vmul.f32 %v906_v48, %v266_v27  ;;  %v304_v3 = vmul.f32 %v908_v49, %v266_v27 }
  0x81   :  { %v132_v29 = vpop.permute.xlu1 %131 }
  0x82   :  { %v197_v31 = vpop.permute.xlu0 %196  ;;  %v167_v6 = vmul.f32 %v893_v42, %v132_v29  ;;  %v168_v7 = vmul.f32 %v895_v43, %v132_v29  ;;  %v169_v11 = vmul.f32 %v897_v44, %v132_v29  ;;  %v170_v12 = vmul.f32 %v899_v45, %v132_v29 }
  0x83   :  { %v232_v13 = vmul.f32 %v918_v56, %v197_v31  ;;  %v233_v14 = vmul.f32 %v920_v57, %v197_v31  ;;  %v234_v15 = vmul.f32 %v922_v58, %v197_v31  ;;  %v235_v16 = vmul.f32 %v924_v59, %v197_v31 }
  0x86   :  { %v201_v38 = vpop.permute.xlu1 %200  ;;  %v193_v39 = vpop.permute.xlu0 %192 }
  0x87   :  { %v236_v17 = vmul.f32 %v918_v56, %v201_v38  ;;  %v237_v18 = vmul.f32 %v920_v57, %v201_v38  ;;  %v951_v19 = vmul.f32 %v922_v58, %v201_v38  ;;  %v239_v20 = vmul.f32 %v924_v59, %v201_v38 }
  0x88   :  { %v228_v23 = vmul.f32 %v918_v56, %v193_v39  ;;  %v957_v24 = vmul.f32 %v920_v57, %v193_v39  ;;  %v960_v29 = vmul.f32 %v922_v58, %v193_v39  ;;  %v963_v31 = vmul.f32 %v924_v59, %v193_v39 }
  0x8b   :  { %v74_v50 = vpop.permute.xlu0 %73  ;;  %v64_v51 = vpop.permute.xlu1 %63 }
  0x8c   :  { %v111_v8 = vmul.f32 %v911_v53, %v74_v50  ;;  %v113_v9 = vmul.f32 %v915_v55, %v74_v50  ;;  %v110_v21 = vmul.f32 %v85_v52, %v74_v50  ;;  %v112_v22 = vmul.f32 %v913_v54, %v74_v50 }
  0x8d   :  { %v102_v32 = vmul.f32 %v85_v52, %v64_v51  ;;  %v103_v33 = vmul.f32 %v911_v53, %v64_v51 }
  0x8e   :  { %v180_v25 = vadd.f32 %v164_v61, %v111_v8  ;;  %v182_v26 = vadd.f32 %v166_v63, %v113_v9  ;;  %v179_v41 = vadd.f32 %v163_v60, %v110_v21  ;;  %v181_v50 = vadd.f32 %v165_v62, %v112_v22 }
  0x8f   :  { %v79_v4 = vpop.permute.xlu0 %78  ;;  %v104_v61 = vmul.f32 %v913_v54, %v64_v51  ;;  %v105_v63 = vmul.f32 %v915_v55, %v64_v51 }
  0x90   :  { %v120_v10 = vpop.permute.xlu1 %119  ;;  %v114_v36 = vmul.f32 %v85_v52, %v79_v4  ;;  %v115_v37 = vmul.f32 %v911_v53, %v79_v4  ;;  %v116_v38 = vmul.f32 %v913_v54, %v79_v4  ;;  %v117_v40 = vmul.f32 %v915_v55, %v79_v4 }
  0x91   :  { %v155_v39 = vmul.f32 %v893_v42, %v120_v10  ;;  %v156_v8 = vmul.f32 %v895_v43, %v120_v10  ;;  %v249_v9 = vadd.f32 %v233_v14, %v180_v25  ;;  %v251_v28 = vadd.f32 %v235_v16, %v182_v26 }
  0x92   :  { %v157_v5 = vmul.f32 %v897_v44, %v120_v10  ;;  %v158_v30 = vmul.f32 %v899_v45, %v120_v10  ;;  %v183_v60 = vadd.f32 %v167_v6, %v114_v36  ;;  %v184_v62 = vadd.f32 %v168_v7, %v115_v37 }
  0x93   :  { %v69_v35 = vpop.permute.xlu0 %68  ;;  %v185_v21 = vadd.f32 %v169_v11, %v116_v38  ;;  %v186_v22 = vadd.f32 %v170_v12, %v117_v40  ;;  %v318_v10 = vadd.f32 %v302_v1, %v249_v9  ;;  %v171_v26 = vadd.f32 %v155_v39, %v102_v32  ;;  %v1062_v32 = vld [vmem:[#allocation5_spill] sm:$0xff] }
  0x94   :  { %v124_v27 = vpop.permute.xlu1 %123  ;;  %v106_v34 = vmul.f32 %v85_v52, %v69_v35  ;;  %v107_v51 = vmul.f32 %v911_v53, %v69_v35  ;;  %v108_v58 = vmul.f32 %v913_v54, %v69_v35  ;;  %v109_v57 = vmul.f32 %v915_v55, %v69_v35 }
  0x95   :  { %v159_v59 = vmul.f32 %v893_v42, %v124_v27  ;;  %v160_v14 = vmul.f32 %v895_v43, %v124_v27  ;;  %v161_v25 = vmul.f32 %v897_v44, %v124_v27  ;;  %v162_v52 = vmul.f32 %v899_v45, %v124_v27 }
  0x96   :  { %v320_v42 = vadd.f32 %v304_v3, %v251_v28  ;;  %v248_v7 = vadd.f32 %v232_v13, %v179_v41  ;;  %v250_v11 = vadd.f32 %v234_v15, %v181_v50  ;;  %v172_v12 = vadd.f32 %v156_v8, %v103_v33  ;;  %v1063_v41 = vld [vmem:[#allocation6_spill] sm:$0xff] }
  0x97   :  { %v338_v16 = vpop.permute.xlu0 %337  ;;  %v175_v6 = vadd.f32 %v159_v59, %v106_v34  ;;  %v173_v36 = vadd.f32 %v157_v5, %v104_v61  ;;  %v174_v55 = vadd.f32 %v158_v30, %v105_v63  ;;  %v176_v43 = vadd.f32 %v160_v14, %v107_v51  ;;  %v1064_v61 = vld [vmem:[#allocation7_spill] sm:$0xff] }
  0x98   :  { %v982_v37 = vadd.f32 %v338_v16, %v318_v10  ;;  %v984_v54 = vadd.f32 %v338_v16, %v320_v42  ;;  %v253_v35 = vadd.f32 %v237_v18, %v184_v62  ;;  %v255_v38 = vadd.f32 %v239_v20, %v186_v22 }
  0x99   :  { %v270_v4 = vpop.permute.xlu1 %269  ;;  %v177_v44 = vadd.f32 %v161_v25, %v108_v58  ;;  %v178_v40 = vadd.f32 %v162_v52, %v109_v57  ;;  %v252_v28 = vadd.f32 %v236_v17, %v183_v60  ;;  %v244_v59 = vadd.f32 %v228_v23, %v175_v6 }
  0x9a   :  { %v306_v45 = vmul.f32 %v904_v47, %v270_v4  ;;  %v308_v34 = vmul.f32 %v908_v49, %v270_v4  ;;  %v317_v1 = vadd.f32 %v931_v0, %v248_v7  ;;  %v319_v5 = vadd.f32 %v935_v2, %v250_v11 }
  0x9b   :  { %v305_v3 = vmul.f32 %v902_v46, %v270_v4  ;;  %v307_v13 = vmul.f32 %v906_v48, %v270_v4  ;;  %v993_v30 = vmul.f32 0.2, %v982_v37  ;;  %v996_v58 = vmul.f32 0.2, %v984_v54  ;;  %v333_v7 = vpop.permute.xlu0 %332 }
  0x9c   :  { %v245_v17 = vadd.f32 %v957_v24, %v176_v43  ;;  %v1000_v18 = vadd.f32 %v338_v16, %v317_v1  ;;  %v1002_v0 = vadd.f32 %v338_v16, %v319_v5  ;;  %v246_v2 = vadd.f32 %v960_v29, %v177_v44 }
  0x9d   :  { %v247_v20 = vadd.f32 %v963_v31, %v178_v40  ;;  %v322_v23 = vadd.f32 %v306_v45, %v253_v35  ;;  %v254_v27 = vadd.f32 %v951_v19, %v185_v21  ;;  %v324_v63 = vadd.f32 %v308_v34, %v255_v38 }
  0x9e   :  { %v189_v53 = vpop.permute.xlu1 %188  ;;  %v386_v24 = vmax.f32 %v982_v37, %v993_v30  ;;  %v388_v39 = vmax.f32 %v984_v54, %v996_v58  ;;  %v321_v8 = vadd.f32 %v305_v3, %v252_v28  ;;  %v369_v19 = vmul.f32 0.2, %v1000_v18 }
  0x9f   :  { %v224_v57 = vmul.f32 %v918_v56, %v189_v53  ;;  %v225_v33 = vmul.f32 %v1062_v32, %v189_v53  ;;  %v226_v50 = vmul.f32 %v1063_v41, %v189_v53  ;;  %v227_v56 = vmul.f32 %v1064_v61, %v189_v53 }
  0xa0   :  { %v323_v29 = vadd.f32 %v307_v13, %v254_v27  ;;  %v371_v60 = vmul.f32 0.2, %v1002_v0  ;;  %v385_v53 = vmax.f32 %v1000_v18, %v369_v19 }
  0xa1   :  { %v240_v9 = vadd.f32 %v224_v57, %v171_v26  ;;  %v241_v14 = vadd.f32 %v225_v33, %v172_v12  ;;  %v242_v16 = vadd.f32 %v226_v50, %v173_v36  ;;  %v243_v25 = vadd.f32 %v227_v56, %v174_v55 }
  0xa2   :  { %v387_v37 = vmax.f32 %v1002_v0, %v371_v60 }
  0xa3   :  { %v258_v15 = vpop.permute.xlu1 %257 }
  0xa4   :  { %v293_v31 = vmul.f32 %v902_v46, %v258_v15  ;;  %v294_v52 = vmul.f32 %v904_v47, %v258_v15  ;;  %v295_v10 = vmul.f32 %v906_v48, %v258_v15  ;;  %v296_v11 = vmul.f32 %v908_v49, %v258_v15 }
  0xa6   :  { %v310_v44 = vadd.f32 %v294_v52, %v241_v14  ;;  %v311_v40 = vadd.f32 %v295_v10, %v242_v16  ;;  %v312_v34 = vadd.f32 %v296_v11, %v243_v25  ;;  %v750_v16 = vld [vmem:[%s1045_s4 + $0x8] sm:$0xff]  }
  0xa7   :  { %v262_v4 = vpop.permute.xlu1 %261 }
  0xa8   :  { %v297_v62 = vmul.f32 %v902_v46, %v262_v4  ;;  %v298_v21 = vmul.f32 %v904_v47, %v262_v4  ;;  %v299_v22 = vmul.f32 %v906_v48, %v262_v4  ;;  %v300_v51 = vmul.f32 %v908_v49, %v262_v4 }
  0xa9   :  { %v309_v46 = vadd.f32 %v293_v31, %v240_v9 }
  0xaa   :  { %v313_v42 = vadd.f32 %v297_v62, %v244_v59  ;;  %v314_v26 = vadd.f32 %v298_v21, %v245_v17  ;;  %v316_v6 = vadd.f32 %v300_v51, %v247_v20  ;;  %v315_v54 = vadd.f32 %v299_v22, %v246_v2 }
  0xac   :  { %v343_v43 = vpop.permute.xlu1 %342  ;;  %v350_v12 = vadd.f32 %v333_v7, %v314_v26  ;;  %v352_v36 = vadd.f32 %v333_v7, %v316_v6  ;;  %v349_v55 = vadd.f32 %v333_v7, %v313_v42  ;;  %v351_v58 = vadd.f32 %v333_v7, %v315_v54  ;;  %v409_v42 = vpop.permute.xlu0 %408 }
  0xad   :  { %v358_v35 = vadd.f32 %v343_v43, %v322_v23  ;;  %v360_v47 = vadd.f32 %v343_v43, %v324_v63  ;;  %v357_v38 = vadd.f32 %v343_v43, %v321_v8  ;;  %v359_v48 = vadd.f32 %v343_v43, %v323_v29 }
  0xae   :  { %v366_v45 = vmul.f32 0.2, %v350_v12  ;;  %v365_v28 = vmul.f32 0.2, %v349_v55  ;;  %v368_v30 = vmul.f32 0.2, %v352_v36 }
  0xaf   :  { %v374_v49 = vmul.f32 0.2, %v358_v35  ;;  %v376_v59 = vmul.f32 0.2, %v360_v47  ;;  %v373_v1 = vmul.f32 0.2, %v357_v38 }
  0xb0   :  { %v328_v5 = vpop.permute.xlu1 %327  ;;  %v375_v3 = vmul.f32 0.2, %v359_v48  ;;  %v382_v13 = vmax.f32 %v350_v12, %v366_v45  ;;  %v381_v41 = vmax.f32 %v349_v55, %v365_v28  ;;  %v367_v31 = vmul.f32 0.2, %v351_v58 }
  0xb1   :  { %v345_v57 = vadd.f32 %v328_v5, %v309_v46  ;;  %v346_v15 = vadd.f32 %v328_v5, %v310_v44  ;;  %v347_v17 = vadd.f32 %v328_v5, %v311_v40  ;;  %v348_v18 = vadd.f32 %v328_v5, %v312_v34 }
  0xb2   :  { %v390_v0 = vmax.f32 %v358_v35, %v374_v49  ;;  %v392_v2 = vmax.f32 %v360_v47, %v376_v59  ;;  %v389_v20 = vmax.f32 %v357_v38, %v373_v1  ;;  %v391_v23 = vmax.f32 %v359_v48, %v375_v3  ;;  %v419_v48 = vpop.permute.xlu0 %418 }
  0xb3   :  { %v361_v27 = vmul.f32 0.2, %v345_v57  ;;  %v362_v32 = vmul.f32 0.2, %v346_v15  ;;  %v363_v33 = vmul.f32 0.2, %v347_v17  ;;  %v384_v19 = vmax.f32 %v352_v36, %v368_v30 }
  0xb4   :  { %v364_v50 = vmul.f32 0.2, %v348_v18  ;;  %v398_v61 = vpack.c.bf16 %v390_v0, %v386_v24  ;;  %v400_v56 = vpack.c.bf16 %v392_v2, %v388_v39  ;;  %v397_v63 = vpack.c.bf16 %v389_v20, %v385_v53  ;;  %v749_v24 = vld [vmem:[%s1045_s4] sm:$0xff]   ;;  %v404_v25 = vpop.permute.xlu1 %403 }
  0xb5   :  { %v399_v8 = vpack.c.bf16 %v391_v23, %v387_v37  ;;  %v378_v29 = vmax.f32 %v346_v15, %v362_v32  ;;  %v377_v9 = vmax.f32 %v345_v57, %v361_v27  ;;  %v379_v60 = vmax.f32 %v347_v17, %v363_v33 }
  0xb6   :  { %450 = vmatprep.subr.bf16.mxu0 %v398_v61  ;;  %503 = vmatprep.subr.bf16.mxu1 %v400_v56  ;;  %v380_v4 = vmax.f32 %v348_v18, %v364_v50  ;;  %v383_v22 = vmax.f32 %v351_v58, %v367_v31  ;;  %v1065_v39 = vmov 0  }
  0xb7   :  { %451 = vmatpush1.bf16.msra.mxu0 %v397_v63  ;;  %504 = vmatpush1.bf16.msra.mxu1 %v399_v8  ;;  %v394_v62 = vpack.c.bf16 %v382_v13, %v378_v29  ;;  %v393_v21 = vpack.c.bf16 %v381_v41, %v377_v9 }
  0xb8   :  { %v396_v51 = vpack.c.bf16 %v384_v19, %v380_v4  ;;  %v395_v14 = vpack.c.bf16 %v383_v22, %v379_v60  ;;  %v414_v46 = vpop.permute.xlu1 %413  ;;  %v584_v4 = vpop.permute.xlu0 %583 }
  0xb9   :  { %452 = vmatprep.subr.bf16.mxu0 %v394_v62 }
  0xba   :  { %505 = vmatprep.subr.bf16.mxu1 %v396_v51 }
  0xbb   :  { %453 = vmatpush1.bf16.msra.mxu0 %v393_v21  ;;  %506 = vmatpush1.bf16.msra.mxu1 %v395_v14 }
  0xbc   :  { %v579_v5 = vpop.permute.xlu1 %578 }
  0xbe   :  { %725 = vmatmul.mubr.msk.bf16.vlgmr.msra.gmra.mxu0 %vm431_vm0, %v749_v24  ;;  %727 = vmatmul.mubr.msk.bf16.vlgmr.msra.gmra.mxu1 %vm431_vm0, %v749_v24 }
  0xbf   :  { %480 = vmatprep.mubr.bf16.mxu0 %v1065_v39  ;;  %533 = vmatprep.mubr.bf16.mxu1 %v1065_v39 }
  0xc0   :  { %v589_v39 = vpop.permute.xlu1 %588 }
  0xc6   :  { %726 = vmatmul.mubr.msk.bf16.gmra.mxu0 %vm431_vm0, %v750_v16  ;;  %728 = vmatmul.mubr.msk.bf16.gmra.mxu1 %vm431_vm0, %v750_v16 }
 0x17e   :  { %v472_v52 = vpop.f32.mrf.mxu0  ;;  %v525_v10 = vpop.f32.mrf.mxu1 }
 0x17f   :  { %v473_v26 = vadd.f32 %v472_v52, %v404_v25  ;;  %v526_v6 = vadd.f32 %v525_v10, %v404_v25 }
 0x180   :  { %v474_v7 = vpop.f32.mrf.mxu0  ;;  %v527_v11 = vpop.f32.mrf.mxu1 }
 0x181   :  { %v475_v53 = vadd.f32 %v474_v7, %v404_v25  ;;  %v528_v37 = vadd.f32 %v527_v11, %v404_v25  ;;  %v544_v12 = vmul.f32 0.2, %v473_v26  ;;  %v546_v36 = vmul.f32 0.2, %v526_v6 }
 0x182   :  { %v476_v54 = vpop.f32.mrf.mxu0  ;;  %v529_v43 = vpop.f32.mrf.mxu1 }
 0x183   :  { %v477_v55 = vadd.f32 %v476_v54, %v409_v42  ;;  %v530_v35 = vadd.f32 %v529_v43, %v409_v42  ;;  %v545_v44 = vmul.f32 0.2, %v475_v53  ;;  %v547_v40 = vmul.f32 0.2, %v528_v37 }
 0x184   :  { %v478_v47 = vpop.f32.mrf.mxu0  ;;  %v531_v38 = vpop.f32.mrf.mxu1  ;;  %v560_v3 = vmax.f32 %v473_v26, %v544_v12  ;;  %v562_v13 = vmax.f32 %v526_v6, %v546_v36 }
 0x185   :  { %v548_v45 = vmul.f32 0.2, %v477_v55  ;;  %v550_v28 = vmul.f32 0.2, %v530_v35  ;;  %v479_v34 = vadd.f32 %v478_v47, %v409_v42  ;;  %v532_v49 = vadd.f32 %v531_v38, %v409_v42 }
 0x186   :  { %v482_v59 = vpop.f32.mrf.mxu0  ;;  %v535_v1 = vpop.f32.mrf.mxu1  ;;  %v561_v33 = vmax.f32 %v475_v53, %v545_v44  ;;  %v563_v41 = vmax.f32 %v528_v37, %v547_v40  ;;  %v596_v19 = vmul.f32 %v579_v5, %v560_v3  ;;  %v598_v60 = vmul.f32 %v579_v5, %v562_v13 }
 0x187   :  { %v483_v30 = vadd.f32 %v482_v59, %v414_v46  ;;  %v536_v58 = vadd.f32 %v535_v1, %v414_v46  ;;  %v564_v57 = vmax.f32 %v477_v55, %v548_v45  ;;  %v566_v15 = vmax.f32 %v530_v35, %v550_v28  ;;  %v594_v44 = vpop.permute.xlu0 %593 }
 0x188   :  { %v549_v17 = vmul.f32 0.2, %v479_v34  ;;  %v551_v18 = vmul.f32 0.2, %v532_v49  ;;  %v484_v0 = vpop.f32.mrf.mxu0  ;;  %v537_v2 = vpop.f32.mrf.mxu1  ;;  %v597_v16 = vmul.f32 %v579_v5, %v561_v33  ;;  %v599_v25 = vmul.f32 %v579_v5, %v563_v41 }
 0x189   :  { %v552_v20 = vmul.f32 0.2, %v483_v30  ;;  %v554_v23 = vmul.f32 0.2, %v536_v58  ;;  %v485_v27 = vadd.f32 %v484_v0, %v414_v46  ;;  %v538_v32 = vadd.f32 %v537_v2, %v414_v46 }
 0x18a   :  { %v565_v50 = vmax.f32 %v479_v34, %v549_v17  ;;  %v567_v61 = vmax.f32 %v532_v49, %v551_v18  ;;  %v486_v56 = vpop.f32.mrf.mxu0  ;;  %v539_v63 = vpop.f32.mrf.mxu1  ;;  %v600_v62 = vmul.f32 %v584_v4, %v564_v57  ;;  %v602_v21 = vmul.f32 %v584_v4, %v566_v15 }
 0x18b   :  { %v568_v8 = vmax.f32 %v483_v30, %v552_v20  ;;  %v570_v29 = vmax.f32 %v536_v58, %v554_v23  ;;  %v553_v9 = vmul.f32 0.2, %v485_v27  ;;  %v555_v31 = vmul.f32 0.2, %v538_v32 }
 0x18c   :  { %v488_v14 = vpop.f32.mrf.mxu0  ;;  %v541_v24 = vpop.f32.mrf.mxu1  ;;  %v487_v52 = vadd.f32 %v486_v56, %v419_v48  ;;  %v540_v10 = vadd.f32 %v539_v63, %v419_v48  ;;  %v601_v42 = vmul.f32 %v584_v4, %v565_v50  ;;  %v603_v26 = vmul.f32 %v584_v4, %v567_v61 }
 0x18d   :  { %v569_v22 = vmax.f32 %v485_v27, %v553_v9  ;;  %v571_v51 = vmax.f32 %v538_v32, %v555_v31  ;;  %v604_v6 = vmul.f32 %v589_v39, %v568_v8  ;;  %v606_v7 = vmul.f32 %v589_v39, %v570_v29  ;;  %v651_v61 = vpop.permute.xlu1 %650 }
 0x18e   :  { %v556_v11 = vmul.f32 0.2, %v487_v52  ;;  %v558_v46 = vmul.f32 0.2, %v540_v10  ;;  %v489_v53 = vadd.f32 %v488_v14, %v419_v48  ;;  %v542_v37 = vadd.f32 %v541_v24, %v419_v48 }
 0x18f   :  { %v612_v54 = vadd.f32 %v600_v62, %v596_v19  ;;  %v630_v43 = vadd.f32 %v602_v21, %v598_v60  ;;  %v605_v12 = vmul.f32 %v589_v39, %v569_v22  ;;  %v607_v36 = vmul.f32 %v589_v39, %v571_v51  ;;  %v1066_v60 = vld [vmem:[#allocation4_spill] sm:$0xff] }
 0x190   :  { %v572_v55 = vmax.f32 %v487_v52, %v556_v11  ;;  %v574_v35 = vmax.f32 %v540_v10, %v558_v46  ;;  %v557_v47 = vmul.f32 0.2, %v489_v53  ;;  %v559_v38 = vmul.f32 0.2, %v542_v37 }
 0x191   :  { %v621_v40 = vadd.f32 %v601_v42, %v597_v16  ;;  %v639_v45 = vadd.f32 %v603_v26, %v599_v25  ;;  %v613_v28 = vadd.f32 %v612_v54, %v604_v6  ;;  %v631_v34 = vadd.f32 %v630_v43, %v606_v7 }
 0x192   :  { %v608_v49 = vmul.f32 %v594_v44, %v572_v55  ;;  %v610_v59 = vmul.f32 %v594_v44, %v574_v35  ;;  %v573_v1 = vmax.f32 %v489_v53, %v557_v47  ;;  %v575_v5 = vmax.f32 %v542_v37, %v559_v38 }
 0x193   :  { %v622_v3 = vadd.f32 %v621_v40, %v605_v12  ;;  %v640_v13 = vadd.f32 %v639_v45, %v607_v36  ;;  %v656_v62 = vrot.slane %v651_v61, %v1066_v60  ;;  %v775_v55 = vmov 1966171168   ;;  %v1067_v40 = vld [vmem:[#allocation3_spill] sm:$0xff] }
 0x194   :  { %v614_v48 = vadd.f32 %v613_v28, %v608_v49  ;;  %v632_v30 = vadd.f32 %v631_v34, %v610_v59  ;;  %v609_v58 = vmul.f32 %v594_v44, %v573_v1  ;;  %v611_v57 = vmul.f32 %v594_v44, %v575_v5 }
 0x195   :  { %v692_v35 = vunpack.c.l.s4 %v775_v55 }
 0x196   :  { %v615_v15 = vrot.slane %v614_v48, 4  ;;  %v633_v17 = vrot.slane %v632_v30, 4  ;;  %v623_v18 = vadd.f32 %v622_v3, %v609_v58  ;;  %v641_v0 = vadd.f32 %v640_v13, %v611_v57 }
 0x197   :  { %v693_v47 = vunpack.c.0.s8 %v692_v35  ;;  %v1068_v13 = vlaneseq }
 0x198   :  { %v616_v2 = vadd.f32 %v615_v15, %v614_v48  ;;  %v634_v20 = vadd.f32 %v633_v17, %v632_v30  ;;  %v624_v23 = vrot.slane %v623_v18, 4  ;;  %v642_v27 = vrot.slane %v641_v0, 4 }
 0x199   :  { %v696_v45 = vsub.s32 %v693_v47, %v1067_v40  ;;  %vm716_vm1 = vcmp.lt.s32.totalorder %v1068_v13, 512 }
 0x19a   :  { %v617_v32 = vrot.slane %v616_v2, 2  ;;  %v635_v33 = vrot.slane %v634_v20, 2  ;;  %v625_v41 = vadd.f32 %v624_v23, %v623_v18  ;;  %v643_v50 = vadd.f32 %v642_v27, %v641_v0 }
 0x19c   :  { %v618_v56 = vadd.f32 %v617_v32, %v616_v2  ;;  %v636_v63 = vadd.f32 %v635_v33, %v634_v20  ;;  %v626_v8 = vrot.slane %v625_v41, 2  ;;  %v644_v29 = vrot.slane %v643_v50, 2 }
 0x19e   :  { %v619_v9 = vrot.slane %v618_v56, 1  ;;  %v637_v31 = vrot.slane %v636_v63, 1  ;;  %v627_v4 = vadd.f32 %v626_v8, %v625_v41  ;;  %v645_v19 = vadd.f32 %v644_v29, %v643_v50 }
 0x1a0   :  { %v620_v21 = vadd.f32 %v619_v9, %v618_v56  ;;  %v638_v22 = vadd.f32 %v637_v31, %v636_v63  ;;  %v628_v51 = vrot.slane %v627_v4, 1  ;;  %v646_v14 = vrot.slane %v645_v19, 1 }
 0x1a2   :  { %v657_v24 = vadd.f32 %v656_v62, %v620_v21  ;;  %v659_v39 = vadd.f32 %v656_v62, %v638_v22  ;;  %v629_v16 = vadd.f32 %v628_v51, %v627_v4  ;;  %v647_v25 = vadd.f32 %v646_v14, %v645_v19 }
 0x1a4   :  { %v729_v52 = vmul.f32 -1.442695, %v657_v24  ;;  %v731_v10 = vmul.f32 -1.442695, %v659_v39  ;;  %v658_v42 = vadd.f32 %v656_v62, %v629_v16  ;;  %v660_v26 = vadd.f32 %v656_v62, %v647_v25 }
 0x1a6   :  { %755 = vpow2.f32 %v729_v52  ;;  %v730_v6 = vmul.f32 -1.442695, %v658_v42  ;;  %v732_v7 = vmul.f32 -1.442695, %v660_v26 }
 0x1a7   :  { %757 = vpow2.f32 %v731_v10 }
 0x1a8   :  { %759 = vpow2.f32 %v730_v6 }
 0x1a9   :  { %761 = vpow2.f32 %v732_v7 }
 0x1b3   :  { %v756_v11 = vpop.eup %755 }
 0x1b4   :  { %v758_v46 = vpop.eup %757  ;;  %v673_v53 = vadd.f32 1.0, %v756_v11 }
 0x1b5   :  { %v760_v37 = vpop.eup %759  ;;  %v675_v54 = vadd.f32 1.0, %v758_v46 }
 0x1b6   :  { %v762_v43 = vpop.eup %761  ;;  %763 = vrcp.f32 %v673_v53  ;;  %v674_v12 = vadd.f32 1.0, %v760_v37 }
 0x1b7   :  { %765 = vrcp.f32 %v675_v54  ;;  %v676_v36 = vadd.f32 1.0, %v762_v43 }
 0x1b8   :  { %767 = vrcp.f32 %v674_v12 }
 0x1b9   :  { %769 = vrcp.f32 %v676_v36 }
 0x1c3   :  { %v764_v38 = vpop.eup %763 }
 0x1c4   :  { %v766_v44 = vpop.eup %765 }
 0x1c5   :  { %v768_v28 = vpop.eup %767 }
 0x1c6   :  { %v770_v34 = vpop.eup %769  ;;  %v689_v49 = vcombine.low %v764_v38, %v768_v28 }
 0x1c7   :  { %v690_v59 = vcombine.low %v766_v44, %v770_v34 }
 0x1c8   :  { %v697_v1 = vrot.slane %v689_v49, %v696_v45 }
 0x1c9   :  { %v704_v5 = vrot.slane %v690_v59, %v696_v45 }
 0x1cb   :  { %v705_v3 = vcombine.low %v697_v1, %v704_v5 }
 0x1cd   :  { %v712_v48 = vrot.slane %v705_v3, %v696_v45 }
 0x1cf   :  { %718 = vst.msk [vmem:[%s1048_s8] sm:$0xf] %vm716_vm1, %v712_v48 }

</bundles_post_ra>
